<compile_context>
chip_gen: v5e
topology: v5e:2x2
jax: 0.10.0
libtpu: 0.0.40
codegen_flags: <defaults>
</compile_context>

<pallas_src>
import functools
import math

import jax
import jax.numpy as jnp
from jax.experimental import pallas as pl
from jax.experimental.pallas import tpu as pltpu


def self_attention_kernel(xf_ref, yf_ref, zf_ref,
                          wq_ref, bq_ref, wk_ref, bk_ref,
                          wv_ref, bv_ref, wo_ref, bo_ref,
                          out_ref, attn_mean_ref, *, bt, sq, sk):
    d = wq_ref.shape[0]
    scale = 1.0 / math.sqrt(d)

    # --- Q/K/V projections: one wide 2-D MXU matmul each over the full batch
    # tile (better sublane fill than per-batch (S, D) tiles). 1/sqrt(d) is
    # folded into q here instead of scaling the (Sq, Sk) scores later.
    q = (jnp.dot(xf_ref[...], wq_ref[...],
                 preferred_element_type=jnp.float32) + bq_ref[...]) * scale
    k = jnp.dot(yf_ref[...], wk_ref[...],
                preferred_element_type=jnp.float32) + bk_ref[...]
    v = jnp.dot(zf_ref[...], wv_ref[...],
                preferred_element_type=jnp.float32) + bv_ref[...]

    qb = q.reshape(bt, sq, d)
    kb = k.reshape(bt, sk, d)
    vb = v.reshape(bt, sk, d)

    # Scores: batched contraction over the feature dim -> no transposed copy of
    # k is materialized (MXU consumes the transposed contraction natively).
    scores = jnp.einsum('bqd,bkd->bqk', qb, kb,
                        preferred_element_type=jnp.float32)      # (Bt, Sq, Sk)

    # Numerically-stable softmax with deferred normalization: p stays
    # unnormalized, the reciprocal of the row-sum goes to the EUP, and 1/denom
    # is folded into the small (Sq, D) context instead of an (Sq, Sk) divide.
    m = jnp.max(scores, axis=-1, keepdims=True)
    p = jnp.exp(scores - m)
    denom = jnp.sum(p, axis=-1, keepdims=True)
    inv = pl.reciprocal(denom, approx=False)                     # (Bt, Sq, 1)

    context = jnp.einsum('bqk,bkd->bqd', p, vb,
                         preferred_element_type=jnp.float32) * inv
    out = jnp.dot(context.reshape(bt * sq, d), wo_ref[...],
                  preferred_element_type=jnp.float32) + bo_ref[...]
    out_ref[...] = out.astype(out_ref.dtype)

    # torch.mean(attention, dim=-2): skinny batched matmul (1,Sq)@(Sq,Sk) on
    # the MXU using the unnormalized p and the per-row reciprocals.
    inv_row = (inv * (1.0 / sq)).reshape(bt, 1, sq)
    attn_mean = jnp.einsum('bxq,bqk->bxk', inv_row, p,
                           preferred_element_type=jnp.float32)   # (Bt, 1, Sk)
    attn_mean_ref[...] = attn_mean.astype(attn_mean_ref.dtype)


def self_attention(x, y, z, params, *, batch_tile=None):
    """params = (wq, bq, wk, bk, wv, bv, wo, bo) with PyTorch Linear layout
    (W: (out, in), b: (out,)). Returns (output, attention.mean(dim=-2))."""
    B, Sq, D = x.shape
    Sk = y.shape[1]
    assert z.shape == y.shape
    wq, bq, wk, bk, wv, bv, wo, bo = params

    # Glue: pre-transpose weights to (in, out); biases as (1, D) rows.
    wqT, wkT, wvT, woT = wq.T, wk.T, wv.T, wo.T
    bq2, bk2, bv2, bo2 = (b.reshape(1, D) for b in (bq, bk, bv, bo))

    # Batch elements per grid step: amortizes per-step overhead and gives the
    # MXU bigger sublane-filled tiles. (Largest divisor of B up to 8.)
    if batch_tile is None:
        batch_tile = next(bt for bt in range(min(B, 8), 0, -1) if B % bt == 0)
    Bt = batch_tile
    assert B % Bt == 0
    grid = (B // Bt,)

    # Flatten activations to 2-D (rows = batch*seq) so projections are plain
    # 2-D matmuls inside the kernel.
    xf = x.reshape(B * Sq, D)
    yf = y.reshape(B * Sk, D)
    zf = z.reshape(B * Sk, D)

    kernel = functools.partial(self_attention_kernel, bt=Bt, sq=Sq, sk=Sk)

    # Constant index_map -> weights/biases stay resident in VMEM across steps.
    w_spec = pl.BlockSpec((D, D), lambda b: (0, 0))
    b_spec = pl.BlockSpec((1, D), lambda b: (0, 0))

    out_flat, attn_mean = pl.pallas_call(
        kernel,
        out_shape=(
            jax.ShapeDtypeStruct((B * Sq, D), x.dtype),
            jax.ShapeDtypeStruct((B, 1, Sk), jnp.float32),
        ),
        grid_spec=pltpu.PrefetchScalarGridSpec(
            num_scalar_prefetch=0,
            grid=grid,
            in_specs=[
                pl.BlockSpec((Bt * Sq, D), lambda b: (b, 0)),   # x (flattened)
                pl.BlockSpec((Bt * Sk, D), lambda b: (b, 0)),   # y (flattened)
                pl.BlockSpec((Bt * Sk, D), lambda b: (b, 0)),   # z (flattened)
                w_spec, b_spec,                                 # query
                w_spec, b_spec,                                 # key
                w_spec, b_spec,                                 # value
                w_spec, b_spec,                                 # out
            ],
            out_specs=[
                pl.BlockSpec((Bt * Sq, D), lambda b: (b, 0)),
                pl.BlockSpec((Bt, 1, Sk), lambda b: (b, 0, 0)),
            ],
        ),
        compiler_params=pltpu.CompilerParams(
            dimension_semantics=("parallel",)),
    )(xf, yf, zf, wqT, bq2, wkT, bk2, wvT, bv2, woT, bo2)

    # TODO(synk): for production sequence lengths, tile Sq/Sk flash-style with
    # an online softmax instead of materializing the full (Sq, Sk) score tile
    # (mandatory on v7x's 64 MiB VMEM).
    return out_flat.reshape(B, Sq, D), attn_mean.reshape(B, Sk)


def _reference(x, y, z, params):
    wq, bq, wk, bk, wv, bv, wo, bo = params
    D = x.shape[-1]
    q = x @ wq.T + bq
    k = y @ wk.T + bk
    v = z @ wv.T + bv
    scores = jnp.einsum("bqd,bkd->bqk", q, k) / math.sqrt(D)
    attn = jax.nn.softmax(scores, axis=-1)
    ctx = jnp.einsum("bqk,bkd->bqd", attn, v)
    out = ctx @ wo.T + bo
    return out, jnp.mean(attn, axis=-2)


if __name__ == "__main__":
    B, Sq, Sk, D = 2, 8, 8, 32   # small shapes; d_dim=32 instead of default 256

    key = jax.random.PRNGKey(0)
    keys = jax.random.split(key, 12)
    x = jax.random.normal(keys[0], (B, Sq, D), dtype=jnp.float32)
    y = jax.random.normal(keys[1], (B, Sk, D), dtype=jnp.float32)
    z = jax.random.normal(keys[2], (B, Sk, D), dtype=jnp.float32)

    def lin_init(kw, kb):
        bound = 1.0 / math.sqrt(D)
        w = jax.random.uniform(kw, (D, D), jnp.float32, -bound, bound)
        b = jax.random.uniform(kb, (D,), jnp.float32, -bound, bound)
        return w, b

    wq, bq = lin_init(keys[3], keys[4])
    wk, bk = lin_init(keys[5], keys[6])
    wv, bv = lin_init(keys[7], keys[8])
    wo, bo = lin_init(keys[9], keys[10])
    params = (wq, bq, wk, bk, wv, bv, wo, bo)

    out, attn_mean = self_attention(x, y, z, params)
    jax.block_until_ready((out, attn_mean))

    ref_out, ref_attn_mean = _reference(x, y, z, params)
    # Slightly looser tolerance than 1e-5: deferred softmax normalization and
    # MXU-matmul attn-mean reorder the f32 rounding a little.
    assert jnp.allclose(out, ref_out, atol=2e-5, rtol=2e-5)
    assert jnp.allclose(attn_mean, ref_attn_mean, atol=2e-5, rtol=2e-5)

    print("KERNEL_OK")
</pallas_src>

<mosaic_0001>
module attributes {stable_mosaic.version = 11 : i64} {
  func.func @self_attention_kernel(%arg0: i32, %arg1: memref<16x32xf32, #tpu.memory_space<vmem>>, %arg2: memref<16x32xf32, #tpu.memory_space<vmem>>, %arg3: memref<16x32xf32, #tpu.memory_space<vmem>>, %arg4: memref<32x32xf32, #tpu.memory_space<vmem>>, %arg5: memref<1x32xf32, #tpu.memory_space<vmem>>, %arg6: memref<32x32xf32, #tpu.memory_space<vmem>>, %arg7: memref<1x32xf32, #tpu.memory_space<vmem>>, %arg8: memref<32x32xf32, #tpu.memory_space<vmem>>, %arg9: memref<1x32xf32, #tpu.memory_space<vmem>>, %arg10: memref<32x32xf32, #tpu.memory_space<vmem>>, %arg11: memref<1x32xf32, #tpu.memory_space<vmem>>, %arg12: memref<16x32xf32, #tpu.memory_space<vmem>>, %arg13: memref<2x1x8xf32, #tpu.memory_space<vmem>>) attributes {dimension_semantics = [#tpu.dimension_semantics<parallel>], iteration_bounds = array<i64: 1>, scalar_prefetch = 0 : i64, scratch_operands = 0 : i64, tpu.core_type = #tpu.core_type<tc>, window_params = [{transform_indices = @transform_0, window_bounds = array<i64: 16, 32>}, {transform_indices = @transform_1, window_bounds = array<i64: 16, 32>}, {transform_indices = @transform_2, window_bounds = array<i64: 16, 32>}, {pipeline_mode = #tpu.pipeline_mode<synchronous>, transform_indices = @transform_3, window_bounds = array<i64: 32, 32>}, {pipeline_mode = #tpu.pipeline_mode<synchronous>, transform_indices = @transform_4, window_bounds = array<i64: 1, 32>}, {pipeline_mode = #tpu.pipeline_mode<synchronous>, transform_indices = @transform_5, window_bounds = array<i64: 32, 32>}, {pipeline_mode = #tpu.pipeline_mode<synchronous>, transform_indices = @transform_6, window_bounds = array<i64: 1, 32>}, {pipeline_mode = #tpu.pipeline_mode<synchronous>, transform_indices = @transform_7, window_bounds = array<i64: 32, 32>}, {pipeline_mode = #tpu.pipeline_mode<synchronous>, transform_indices = @transform_8, window_bounds = array<i64: 1, 32>}, {pipeline_mode = #tpu.pipeline_mode<synchronous>, transform_indices = @transform_9, window_bounds = array<i64: 32, 32>}, {pipeline_mode = #tpu.pipeline_mode<synchronous>, transform_indices = @transform_10, window_bounds = array<i64: 1, 32>}, {transform_indices = @transform_11, window_bounds = array<i64: 16, 32>}, {transform_indices = @transform_12, window_bounds = array<i64: 2, 1, 8>}]} {
    %c0 = arith.constant 0 : index
    %c0_0 = arith.constant 0 : index
    %0 = vector.load %arg1[%c0, %c0_0] : memref<16x32xf32, #tpu.memory_space<vmem>>, vector<16x32xf32>
    %c0_1 = arith.constant 0 : index
    %c0_2 = arith.constant 0 : index
    %1 = vector.load %arg4[%c0_1, %c0_2] : memref<32x32xf32, #tpu.memory_space<vmem>>, vector<32x32xf32>
    %cst = arith.constant dense<0.000000e+00> : vector<16x32xf32>
    %2 = tpu.matmul %0, %1, %cst {dimension_numbers = #tpu.dot_dimension_numbers<[1], [0], [0], [1], [0, 0, 1, 1], [], []>} : vector<16x32xf32>, vector<32x32xf32>, vector<16x32xf32> -> vector<16x32xf32>
    %c0_3 = arith.constant 0 : index
    %c0_4 = arith.constant 0 : index
    %3 = vector.load %arg5[%c0_3, %c0_4] : memref<1x32xf32, #tpu.memory_space<vmem>>, vector<1x32xf32>
    %4 = vector.broadcast %3 : vector<1x32xf32> to vector<16x32xf32>
    %5 = arith.addf %2, %4 : vector<16x32xf32>
    %cst_5 = arith.constant 0.176776692 : f32
    %6 = vector.broadcast %cst_5 : f32 to vector<16x32xf32>
    %7 = arith.mulf %5, %6 : vector<16x32xf32>
    %c0_6 = arith.constant 0 : index
    %c0_7 = arith.constant 0 : index
    %8 = vector.load %arg2[%c0_6, %c0_7] : memref<16x32xf32, #tpu.memory_space<vmem>>, vector<16x32xf32>
    %c0_8 = arith.constant 0 : index
    %c0_9 = arith.constant 0 : index
    %9 = vector.load %arg6[%c0_8, %c0_9] : memref<32x32xf32, #tpu.memory_space<vmem>>, vector<32x32xf32>
    %cst_10 = arith.constant dense<0.000000e+00> : vector<16x32xf32>
    %10 = tpu.matmul %8, %9, %cst_10 {dimension_numbers = #tpu.dot_dimension_numbers<[1], [0], [0], [1], [0, 0, 1, 1], [], []>} : vector<16x32xf32>, vector<32x32xf32>, vector<16x32xf32> -> vector<16x32xf32>
    %c0_11 = arith.constant 0 : index
    %c0_12 = arith.constant 0 : index
    %11 = vector.load %arg7[%c0_11, %c0_12] : memref<1x32xf32, #tpu.memory_space<vmem>>, vector<1x32xf32>
    %12 = vector.broadcast %11 : vector<1x32xf32> to vector<16x32xf32>
    %13 = arith.addf %10, %12 : vector<16x32xf32>
    %c0_13 = arith.constant 0 : index
    %c0_14 = arith.constant 0 : index
    %14 = vector.load %arg3[%c0_13, %c0_14] : memref<16x32xf32, #tpu.memory_space<vmem>>, vector<16x32xf32>
    %c0_15 = arith.constant 0 : index
    %c0_16 = arith.constant 0 : index
    %15 = vector.load %arg8[%c0_15, %c0_16] : memref<32x32xf32, #tpu.memory_space<vmem>>, vector<32x32xf32>
    %cst_17 = arith.constant dense<0.000000e+00> : vector<16x32xf32>
    %16 = tpu.matmul %14, %15, %cst_17 {dimension_numbers = #tpu.dot_dimension_numbers<[1], [0], [0], [1], [0, 0, 1, 1], [], []>} : vector<16x32xf32>, vector<32x32xf32>, vector<16x32xf32> -> vector<16x32xf32>
    %c0_18 = arith.constant 0 : index
    %c0_19 = arith.constant 0 : index
    %17 = vector.load %arg9[%c0_18, %c0_19] : memref<1x32xf32, #tpu.memory_space<vmem>>, vector<1x32xf32>
    %18 = vector.broadcast %17 : vector<1x32xf32> to vector<16x32xf32>
    %19 = arith.addf %16, %18 : vector<16x32xf32>
    %20 = vector.shape_cast %7 : vector<16x32xf32> to vector<2x8x32xf32>
    %21 = vector.shape_cast %13 : vector<16x32xf32> to vector<2x8x32xf32>
    %22 = vector.shape_cast %19 : vector<16x32xf32> to vector<2x8x32xf32>
    "tpu.trace_start"() <{level = 10 : i32, message = "bqd,bkd->bqk"}> : () -> ()
    %cst_20 = arith.constant dense<0.000000e+00> : vector<2x8x8xf32>
    %23 = tpu.matmul %20, %21, %cst_20 {dimension_numbers = #tpu.dot_dimension_numbers<[2], [2], [1], [1], [0, 0, 0, 1, 1, 1], [0], [0]>} : vector<2x8x32xf32>, vector<2x8x32xf32>, vector<2x8x8xf32> -> vector<2x8x8xf32>
    "tpu.trace_stop"() : () -> ()
    %cst_21 = arith.constant dense<0xFF800000> : vector<2x8xf32>
    %24 = vector.multi_reduction <maximumf>, %23, %cst_21 [2] : vector<2x8x8xf32> to vector<2x8xf32>
    %25 = vector.shape_cast %24 : vector<2x8xf32> to vector<2x8x1xf32>
    %26 = vector.broadcast %25 : vector<2x8x1xf32> to vector<2x8x8xf32>
    %27 = arith.subf %23, %26 : vector<2x8x8xf32>
    %28 = math.exp %27 : vector<2x8x8xf32>
    %cst_22 = arith.constant dense<0.000000e+00> : vector<2x8xf32>
    %29 = vector.multi_reduction <add>, %28, %cst_22 [2] : vector<2x8x8xf32> to vector<2x8xf32>
    %30 = vector.shape_cast %29 : vector<2x8xf32> to vector<2x8x1xf32>
    %31 = tpu.reciprocal %30 : vector<2x8x1xf32> -> vector<2x8x1xf32>
    "tpu.trace_start"() <{level = 10 : i32, message = "bqk,bkd->bqd"}> : () -> ()
    %cst_23 = arith.constant dense<0.000000e+00> : vector<2x8x32xf32>
    %32 = tpu.matmul %28, %22, %cst_23 {dimension_numbers = #tpu.dot_dimension_numbers<[2], [1], [1], [2], [0, 0, 0, 1, 1, 2], [0], [0]>} : vector<2x8x8xf32>, vector<2x8x32xf32>, vector<2x8x32xf32> -> vector<2x8x32xf32>
    "tpu.trace_stop"() : () -> ()
    %33 = vector.broadcast %31 : vector<2x8x1xf32> to vector<2x8x32xf32>
    %34 = arith.mulf %32, %33 : vector<2x8x32xf32>
    %35 = vector.shape_cast %34 : vector<2x8x32xf32> to vector<16x32xf32>
    %c0_24 = arith.constant 0 : index
    %c0_25 = arith.constant 0 : index
    %36 = vector.load %arg10[%c0_24, %c0_25] : memref<32x32xf32, #tpu.memory_space<vmem>>, vector<32x32xf32>
    %cst_26 = arith.constant dense<0.000000e+00> : vector<16x32xf32>
    %37 = tpu.matmul %35, %36, %cst_26 {dimension_numbers = #tpu.dot_dimension_numbers<[1], [0], [0], [1], [0, 0, 1, 1], [], []>} : vector<16x32xf32>, vector<32x32xf32>, vector<16x32xf32> -> vector<16x32xf32>
    %c0_27 = arith.constant 0 : index
    %c0_28 = arith.constant 0 : index
    %38 = vector.load %arg11[%c0_27, %c0_28] : memref<1x32xf32, #tpu.memory_space<vmem>>, vector<1x32xf32>
    %39 = vector.broadcast %38 : vector<1x32xf32> to vector<16x32xf32>
    %40 = arith.addf %37, %39 : vector<16x32xf32>
    %c0_29 = arith.constant 0 : index
    %c0_30 = arith.constant 0 : index
    %41 = vector.load %arg12[%c0_29, %c0_30] : memref<16x32xf32, #tpu.memory_space<vmem>>, vector<16x32xf32>
    tpu.vector_store %arg12[%c0_29, %c0_30], %40 {strides = array<i32>} : memref<16x32xf32, #tpu.memory_space<vmem>>, vector<16x32xf32>,
    %cst_31 = arith.constant 1.250000e-01 : f32
    %42 = vector.broadcast %cst_31 : f32 to vector<2x8x1xf32>
    %43 = arith.mulf %31, %42 : vector<2x8x1xf32>
    %44 = vector.shape_cast %43 : vector<2x8x1xf32> to vector<2x1x8xf32>
    "tpu.trace_start"() <{level = 10 : i32, message = "bxq,bqk->bxk"}> : () -> ()
    %cst_32 = arith.constant dense<0.000000e+00> : vector<2x1x8xf32>
    %45 = tpu.matmul %44, %28, %cst_32 {dimension_numbers = #tpu.dot_dimension_numbers<[2], [1], [1], [2], [0, 0, 0, 1, 1, 2], [0], [0]>} : vector<2x1x8xf32>, vector<2x8x8xf32>, vector<2x1x8xf32> -> vector<2x1x8xf32>
    "tpu.trace_stop"() : () -> ()
    %c0_33 = arith.constant 0 : index
    %c0_34 = arith.constant 0 : index
    %c0_35 = arith.constant 0 : index
    %46 = vector.load %arg13[%c0_33, %c0_34, %c0_35] : memref<2x1x8xf32, #tpu.memory_space<vmem>>, vector<2x1x8xf32>
    tpu.vector_store %arg13[%c0_33, %c0_34, %c0_35], %45 {strides = array<i32>} : memref<2x1x8xf32, #tpu.memory_space<vmem>>, vector<2x1x8xf32>,
    return
  }
  func.func @transform_0(%arg0: i32) -> (i32, i32) {
    %c0_i32 = arith.constant 0 : i32
    %c0_i32_0 = arith.constant 0 : i32
    return %arg0, %c0_i32 : i32, i32
  }
  func.func @transform_1(%arg0: i32) -> (i32, i32) {
    %c0_i32 = arith.constant 0 : i32
    %c0_i32_0 = arith.constant 0 : i32
    return %arg0, %c0_i32 : i32, i32
  }
  func.func @transform_2(%arg0: i32) -> (i32, i32) {
    %c0_i32 = arith.constant 0 : i32
    %c0_i32_0 = arith.constant 0 : i32
    return %arg0, %c0_i32 : i32, i32
  }
  func.func @transform_3(%arg0: i32) -> (i32, i32) {
    %c0_i32 = arith.constant 0 : i32
    %c0_i32_0 = arith.constant 0 : i32
    %c0_i32_1 = arith.constant 0 : i32
    return %c0_i32, %c0_i32_0 : i32, i32
  }
  func.func @transform_4(%arg0: i32) -> (i32, i32) {
    %c0_i32 = arith.constant 0 : i32
    %c0_i32_0 = arith.constant 0 : i32
    %c0_i32_1 = arith.constant 0 : i32
    return %c0_i32, %c0_i32_0 : i32, i32
  }
  func.func @transform_5(%arg0: i32) -> (i32, i32) {
    %c0_i32 = arith.constant 0 : i32
    %c0_i32_0 = arith.constant 0 : i32
    %c0_i32_1 = arith.constant 0 : i32
    return %c0_i32, %c0_i32_0 : i32, i32
  }
  func.func @transform_6(%arg0: i32) -> (i32, i32) {
    %c0_i32 = arith.constant 0 : i32
    %c0_i32_0 = arith.constant 0 : i32
    %c0_i32_1 = arith.constant 0 : i32
    return %c0_i32, %c0_i32_0 : i32, i32
  }
  func.func @transform_7(%arg0: i32) -> (i32, i32) {
    %c0_i32 = arith.constant 0 : i32
    %c0_i32_0 = arith.constant 0 : i32
    %c0_i32_1 = arith.constant 0 : i32
    return %c0_i32, %c0_i32_0 : i32, i32
  }
  func.func @transform_8(%arg0: i32) -> (i32, i32) {
    %c0_i32 = arith.constant 0 : i32
    %c0_i32_0 = arith.constant 0 : i32
    %c0_i32_1 = arith.constant 0 : i32
    return %c0_i32, %c0_i32_0 : i32, i32
  }
  func.func @transform_9(%arg0: i32) -> (i32, i32) {
    %c0_i32 = arith.constant 0 : i32
    %c0_i32_0 = arith.constant 0 : i32
    %c0_i32_1 = arith.constant 0 : i32
    return %c0_i32, %c0_i32_0 : i32, i32
  }
  func.func @transform_10(%arg0: i32) -> (i32, i32) {
    %c0_i32 = arith.constant 0 : i32
    %c0_i32_0 = arith.constant 0 : i32
    %c0_i32_1 = arith.constant 0 : i32
    return %c0_i32, %c0_i32_0 : i32, i32
  }
  func.func @transform_11(%arg0: i32) -> (i32, i32) {
    %c0_i32 = arith.constant 0 : i32
    %c0_i32_0 = arith.constant 0 : i32
    return %arg0, %c0_i32 : i32, i32
  }
  func.func @transform_12(%arg0: i32) -> (i32, i32, i32) {
    %c0_i32 = arith.constant 0 : i32
    %c0_i32_0 = arith.constant 0 : i32
    %c0_i32_1 = arith.constant 0 : i32
    return %arg0, %c0_i32, %c0_i32_0 : i32, i32, i32
  }
}

</mosaic_0001>

<bundles_post_ra>
// kernel: tpu_custom_call.1
= control target key start
LH: loop header
LB: loop body
LE: loop exit
PB: predicated region body
PF: predicated region fallthrough
CT: control target
= control target key end

     0   :  { %18 = vsyncpa [#allocation3], 0  ;;  %s986_s0 = inlined_call_operand.hbm [shape: f32[16,32], index: 0, kind: input, shape index: {}]   ;;  %s987_s1 = inlined_call_operand.hbm [shape: f32[16,32], index: 1, kind: input, shape index: {}]   ;;  %s988_s2 = inlined_call_operand.hbm [shape: f32[16,32], index: 2, kind: input, shape index: {}]   ;;  %s989_s3 = inlined_call_operand.hbm [shape: f32[32,32], index: 3, kind: input, shape index: {}]   ;;  %s990_s4 = inlined_call_operand.vmem [shape: f32[1,32], index: 4, kind: input, shape index: {}]   ;;  %s991_s5 = inlined_call_operand.hbm [shape: f32[32,32], index: 5, kind: input, shape index: {}]   ;;  %s992_s6 = inlined_call_operand.vmem [shape: f32[1,32], index: 6, kind: input, shape index: {}]   ;;  %s993_s7 = inlined_call_operand.hbm [shape: f32[32,32], index: 7, kind: input, shape index: {}]   ;;  %s994_s8 = inlined_call_operand.vmem [shape: f32[1,32], index: 8, kind: input, shape index: {}]   ;;  %s995_s9 = inlined_call_operand.hbm [shape: f32[32,32], index: 9, kind: input, shape index: {}]   ;;  %s996_s10 = inlined_call_operand.vmem [shape: f32[1,32], index: 10, kind: input, shape index: {}]   ;;  %s997_s11 = inlined_call_operand.hbm [shape: f32[16,32], index: 11, kind: output, shape index: {0}]   ;;  %s998_s12 = inlined_call_operand.hbm [shape: f32[2,1,8], index: 12, kind: output, shape index: {1}]  }
   0x1   :  { %19 = vsyncpa [#allocation6], 0 }
   0x2   :  { %20 = vsyncpa [#allocation9], 0 }
   0x3   :  { %21 = vsyncpa [#allocation12], 0 }
   0x4   :  { %22 = vsyncpa [#allocation4], 0 }
   0x5   :  { %23 = vsyncpa [#allocation16], 0  ;;  %s41_s23 = sshll.u32 %s987_s1, 4  ;;  %s821_s24 = smov [#allocation5]   ;;  %s42_s23 = int_to_ptr.hbm [resolvable:$true] %s41_s23 }
   0x6   :  { %s43_s25 = sshll.u32 %s821_s24, 4  ;;  %s67_s28 = sshll.u32 %s989_s3, 4  ;;  %s44_s25 = int_to_ptr.vmem [resolvable:$true] %s43_s25  ;;  %s68_s28 = int_to_ptr.hbm [resolvable:$true] %s67_s28 }
   0x7   :  { %s822_s29 = smov 128   ;;  %s823_s30 = smov 8  }
   0x8   :  { %49 = dma.hbm_to_vmem [thread:$0]  %s42_s23, 256, %s44_s25, [#allocation6], %s822_s29, %s822_s29, %s823_s30  }
   0x9   :  { %s824_s13 = smov [#allocation8]   ;;  %s97_s1 = sshll.u32 %s993_s7, 4  ;;  %s98_s1 = int_to_ptr.hbm [resolvable:$true] %s97_s1 }
   0xa   :  { %s69_s14 = sshll.u32 %s824_s13, 4  ;;  %s28_s18 = sshll.u32 %s986_s0, 4  ;;  %s70_s14 = int_to_ptr.vmem [resolvable:$true] %s69_s14  ;;  %s29_s18 = int_to_ptr.hbm [resolvable:$true] %s28_s18 }
   0xb   :  { %75 = dma.hbm_to_vmem [thread:$0]  %s68_s28, 512, %s70_s14, [#allocation9], %s822_s29, %s822_s29, %s823_s30  }
   0xc   :  { %s825_s19 = smov [#allocation11]   ;;  %s826_s21 = smov [#allocation2]  }
   0xd   :  { %s99_s20 = sshll.u32 %s825_s19, 4  ;;  %s30_s7 = sshll.u32 %s826_s21, 4  ;;  %s100_s20 = int_to_ptr.vmem [resolvable:$true] %s99_s20  ;;  %s31_s7 = int_to_ptr.vmem [resolvable:$true] %s30_s7 }
   0xe   :  { %105 = dma.hbm_to_vmem [thread:$0]  %s98_s1, 512, %s100_s20, [#allocation12], %s822_s29, %s822_s29, %s823_s30  }
   0xf   :  { %s54_s24 = sshll.u32 %s988_s2, 4  ;;  %s82_s26 = sshll.u32 %s991_s5, 4  ;;  %s55_s24 = int_to_ptr.hbm [resolvable:$true] %s54_s24  ;;  %s83_s26 = int_to_ptr.hbm [resolvable:$true] %s82_s26 }
  0x10   :  { %36 = dma.hbm_to_vmem [thread:$0]  %s29_s18, 256, %s31_s7, [#allocation3], %s822_s29, %s822_s29, %s823_s30  }
  0x11   :  { %s827_s27 = smov [#allocation7]   ;;  %s828_s13 = smov [#allocation10]  }
  0x12   :  { %s56_s28 = sshll.u32 %s827_s27, 4  ;;  %s84_s2 = sshll.u32 %s828_s13, 4  ;;  %s57_s28 = int_to_ptr.vmem [resolvable:$true] %s56_s28  ;;  %s85_s2 = int_to_ptr.vmem [resolvable:$true] %s84_s2 }
  0x13   :  { %62 = dma.hbm_to_vmem [thread:$0]  %s55_s24, 256, %s57_s28, [#allocation6], %s822_s29, %s822_s29, %s823_s30  }
  0x14   :  { %s112_s16 = sshll.u32 %s995_s9, 4  ;;  %s829_s5 = smov [#allocation13]   ;;  %s113_s16 = int_to_ptr.hbm [resolvable:$true] %s112_s16 }
  0x15   :  { %90 = dma.hbm_to_vmem [thread:$0]  %s83_s26, 512, %s85_s2, [#allocation9], %s822_s29, %s822_s29, %s823_s30  }
  0x16   :  { %s114_s1 = sshll.u32 %s829_s5, 4  ;;  %s115_s1 = int_to_ptr.vmem [resolvable:$true] %s114_s1 }
  0x17   :  { %120 = dma.hbm_to_vmem [thread:$0]  %s113_s16, 512, %s115_s1, [#allocation12], %s822_s29, %s822_s29, %s823_s30  }
  0x18   :  { %809 = dma.done.wait [#allocation3], 256  }
  0x19   :  { %810 = vsyncadd [#allocation3], 4294967040 }
  0x1a   :  { %811 = dma.done.wait [#allocation6], 512  }
  0x1b   :  { %812 = vsyncadd [#allocation6], 4294966784 }
  0x1c   :  { %813 = dma.done.wait [#allocation9], 1024  }
  0x1d   :  { %814 = vsyncadd [#allocation9], 4294966272 }
  0x1e   :  { %815 = dma.done.wait [#allocation12], 1024  }
  0x1f   :  { %816 = vsyncadd [#allocation12], 4294966272  ;;  %v198_v0 = vld [vmem:[#allocation10 + $0x18] sm:$0xff]  ;;  %v197_v2 = vld [vmem:[#allocation10 + $0x10] sm:$0xff]  ;;  %vm161_vm0 = vcmask 261120   ;;  %vm323_vm1 = vcmask 64512   ;;  %v460_v61 = vlaneseq }
  0x20   :  { %v156_v1 = vld [vmem:[#allocation8 + $0x18] sm:$0xff]  ;;  %221 = vmatpush.msra.mxu1 %v198_v0  ;;  %v155_v3 = vld [vmem:[#allocation8 + $0x10] sm:$0xff]  ;;  %v196_v4 = vld [vmem:[#allocation10 + $0x8] sm:$0xff]  ;;  %vm509_vm10 = vcmask 57344   ;;  %s830_s20 = smov [#allocation14]   ;;  %s518_s23 = sshll.u32 %s997_s11, 4  ;;  %s519_s23 = int_to_ptr.hbm [resolvable:$true] %s518_s23 }
  0x21   :  { %180 = vmatpush.msra.mxu0 %v156_v1  ;;  %v154_v5 = vld [vmem:[#allocation8 + $0x8] sm:$0xff]  ;;  %v195_v6 = vld [vmem:[#allocation10] sm:$0xff]  ;;  %v151_v9 = vld [vmem:[#allocation2] sm:$0xff]  ;;  %s516_s21 = sshll.u32 %s830_s20, 4  ;;  %s531_s26 = sshll.u32 %s998_s12, 4  ;;  %s517_s21 = int_to_ptr.vmem [resolvable:$true] %s516_s21  ;;  %s532_s26 = int_to_ptr.hbm [resolvable:$true] %s531_s26 }
  0x22   :  { %222 = vmatpush.msra.mxu1 %v197_v2  ;;  %v153_v7 = vld [vmem:[#allocation8] sm:$0xff]  ;;  %v194_v10 = vld [vmem:[#allocation5 + $0x8] sm:$0xff]  ;;  %v152_v11 = vld [vmem:[#allocation2 + $0x8] sm:$0xff]  ;;  %s832_s11 = smov 16   ;;  %s833_s27 = smov 1  }
  0x23   :  { %181 = vmatpush.msra.mxu0 %v155_v3  ;;  %v193_v8 = vld [vmem:[#allocation5] sm:$0xff]  ;;  %v237_v12 = vld [vmem:[#allocation11 + $0x18] sm:$0xff]  ;;  %v236_v13 = vld [vmem:[#allocation11 + $0x10] sm:$0xff]  ;;  %v461_v3 = vand.u32 127, %v460_v61 }
  0x24   :  { %223 = vmatpush.msra.mxu1 %v196_v4  ;;  %260 = vmatpush.msra.mxu2 %v237_v12  ;;  %v235_v14 = vld [vmem:[#allocation11 + $0x8] sm:$0xff]  ;;  %v234_v15 = vld [vmem:[#allocation11] sm:$0xff]  ;;  %v232_v16 = vld [vmem:[#allocation7] sm:$0xff] }
  0x25   :  { %182 = vmatpush.msra.mxu0 %v154_v5  ;;  %v581_v17 = vld [vmem:[%s992_s6] ss:$0 sm:$0xff]  ;;  %v233_v29 = vld [vmem:[#allocation7 + $0x8] sm:$0xff]  ;;  %v419_v51 = vld [vmem:[#allocation13 + $0x8] sm:$0xff] }
  0x26   :  { %224 = vmatpush.msra.mxu1 %v195_v6  ;;  %261 = vmatpush.msra.mxu2 %v236_v13  ;;  %v582_v18 = vld [vmem:[%s990_s4] ss:$0 sm:$0xff]  ;;  %v421_v49 = vld [vmem:[#allocation13 + $0x18] sm:$0xff]  ;;  %v418_v52 = vld [vmem:[#allocation13] sm:$0xff] }
  0x27   :  { %183 = vmatpush.msra.mxu0 %v153_v7  ;;  %554 = vmatmul.msk.f32.vlgmr.msra.gmra.mxu1 %vm161_vm0, %v193_v8  ;;  %v583_v34 = vld [vmem:[%s994_s8] ss:$0 sm:$0xff] }
  0x28   :  { %552 = vmatmul.msk.f32.vlgmr.msra.gmra.mxu0 %vm161_vm0, %v151_v9  ;;  %262 = vmatpush.msra.mxu2 %v235_v14  ;;  %v420_v50 = vld [vmem:[#allocation13 + $0x10] sm:$0xff] }
  0x29   :  { %444 = vmatpush.msrb.mxu1 %v421_v49 }
  0x2a   :  { %263 = vmatpush.msra.mxu2 %v234_v15 }
  0x2b   :  { %556 = vmatmul.msk.f32.vlgmr.msra.gmra.mxu2 %vm161_vm0, %v232_v16  ;;  %445 = vmatpush.msrb.mxu1 %v420_v50 }
  0x2d   :  { %446 = vmatpush.msrb.mxu1 %v419_v51 }
  0x2f   :  { %555 = vmatmul.msk.f32.gmra.mxu1 %vm161_vm0, %v194_v10 }
  0x30   :  { %553 = vmatmul.msk.f32.gmra.mxu0 %vm161_vm0, %v152_v11  ;;  %447 = vmatpush.msrb.mxu1 %v418_v52 }
  0x33   :  { %557 = vmatmul.msk.f32.gmra.mxu2 %vm161_vm0, %v233_v29 }
  0xa4   :  { %v226_v19 = vpop.f32.mrf.mxu1 }
  0xa5   :  { %v185_v20 = vpop.f32.mrf.mxu0  ;;  %v227_v21 = vadd.f32 %v581_v17, %v226_v19 }
  0xa6   :  { %v186_v22 = vadd.f32 %v582_v18, %v185_v20 }
  0xa7   :  { %558 = vmatpush.xpose.msk.msra.mxu3 %vm161_vm0, %v227_v21  ;;  %v584_v21 = vld [vmem:[%s996_s10] ss:$0 sm:$0xff]  ;;  %s831_s10 = smov [#allocation15]  }
  0xa8   :  { %v191_v23 = vmul.f32 0.17677669, %v186_v22  ;;  %s529_s24 = sshll.u32 %s831_s10, 4  ;;  %s530_s24 = int_to_ptr.vmem [resolvable:$true] %s529_s24 }
  0xaa   :  { %559 = vmatmul.msk.f32.vlgmr.msra.gmra.mxu3 %vm161_vm0, %v191_v23 }
  0xac   :  { %v229_v24 = vpop.f32.mrf.mxu1 }
  0xad   :  { %v188_v25 = vpop.f32.mrf.mxu0  ;;  %v230_v26 = vadd.f32 %v581_v17, %v229_v24 }
  0xae   :  { %v189_v27 = vadd.f32 %v582_v18, %v188_v25  ;;  %v265_v35 = vpop.f32.mrf.mxu2 }
  0xaf   :  { %560 = vmatpush.xpose.msk.msrb.mxu3 %vm161_vm0, %v230_v26  ;;  %v266_v36 = vadd.f32 %v583_v34, %v265_v35 }
  0xb0   :  { %v192_v28 = vmul.f32 0.17677669, %v189_v27 }
  0xb2   :  { %561 = vmatmul.msk.f32.vlgmr.msrb.gmra.mxu3 %vm161_vm0, %v192_v28 }
  0xb3   :  { %388 = vmatpush.msra.mxu3 %v266_v36 }
  0xb6   :  { %v268_v37 = vpop.f32.mrf.mxu2 }
  0xb7   :  { %v269_v38 = vadd.f32 %v583_v34, %v268_v37 }
  0xb9   :  { %411 = vmatpush.msrb.mxu0 %v269_v38 }
 0x12d   :  { %v294_v30 = vpop.f32.mrf.mxu3 }
 0x12e   :  { %v324_v31 = vsel %vm323_vm1, %v294_v30, -inf }
 0x12f   :  { %325 = vmax.xlane.f32.xlu0 %v324_v31 }
 0x135   :  { %v320_v32 = vpop.f32.mrf.mxu3 }
 0x136   :  { %v327_v33 = vsel %vm323_vm1, %v320_v32, -inf }
 0x137   :  { %328 = vmax.xlane.f32.xlu0 %v327_v33 }
 0x1a2   :  { %v326_v39 = vpop.xlane.xlu0 %325 }
 0x1a3   :  { %v330_v40 = vsub.f32 %v294_v30, %v326_v39 }
 0x1a5   :  { %v332_v41 = vmul.f32 1.442695, %v330_v40 }
 0x1a7   :  { %585 = vpow2.f32 %v332_v41 }
 0x1aa   :  { %v329_v42 = vpop.xlane.xlu0 %328 }
 0x1ab   :  { %v331_v43 = vsub.f32 %v320_v32, %v329_v42 }
 0x1ad   :  { %v586_v44 = vpop.eup %585  ;;  %v334_v45 = vmul.f32 1.442695, %v331_v43 }
 0x1ae   :  { %562 = vmatmul.msk.f32.vlgmr.msra.gmra.mxu3 %vm323_vm1, %v586_v44  ;;  %480 = vmatpush.msrb.mxu2 %v586_v44  ;;  %v336_v46 = vsel %vm323_vm1, %v586_v44, 0.0 }
 0x1af   :  { %587 = vpow2.f32 %v334_v45  ;;  %337 = vadd.xlane.f32.xlu1 %v336_v46 }
 0x1b5   :  { %v588_v47 = vpop.eup %587 }
 0x1b6   :  { %563 = vmatmul.msk.f32.vlgmr.msrb.gmra.mxu0 %vm323_vm1, %v588_v47  ;;  %504 = vmatpush.msrb.mxu3 %v588_v47  ;;  %v339_v48 = vsel %vm323_vm1, %v588_v47, 0.0 }
 0x1b7   :  { %340 = vadd.xlane.f32.xlu1 %v339_v48 }
 0x222   :  { %v338_v53 = vpop.xlane.xlu1 %337 }
 0x223   :  { %589 = vrcp.f32 %v338_v53  ;;  %v353_v58 = vand.u32 2147483648, %v338_v53  ;;  %v351_v60 = vand.u32 2147483647, %v338_v53  ;;  %vm347_vm3 = vweird.f32 %v338_v53 }
 0x225   :  { %v354_v0 = vor.u32 1.1754944e-38, %v353_v58  ;;  %vm352_vm5 = vcmp.eq.f32.partialorder %v351_v60, 8.507059e+37 }
 0x229   :  { %v590_v54 = vpop.eup %589 }
 0x22a   :  { %v343_v55 = vmul.f32 %v590_v54, %v338_v53  ;;  %v341_v56 = vpop.xlane.xlu1 %340  ;;  %vm348_vm2 = vweird.f32 %v590_v54 }
 0x22b   :  { %591 = vrcp.f32 %v341_v56  ;;  %vm349_vm4 = vmor %vm347_vm3, %vm348_vm2  ;;  %v367_v9 = vand.u32 2147483648, %v341_v56  ;;  %v365_v12 = vand.u32 2147483647, %v341_v56  ;;  %vm361_vm7 = vweird.f32 %v341_v56 }
 0x22c   :  { %v344_v57 = vsub.f32 1.0, %v343_v55 }
 0x22d   :  { %v368_v14 = vor.u32 1.1754944e-38, %v367_v9  ;;  %vm366_vm9 = vcmp.eq.f32.partialorder %v365_v12, 8.507059e+37 }
 0x22e   :  { %v345_v59 = vmul.f32 %v590_v54, %v344_v57 }
 0x230   :  { %v346_v62 = vadd.f32 %v590_v54, %v345_v59 }
 0x231   :  { %v592_v63 = vpop.eup %591  ;;  %v390_v5 = vpop.f32.mrf.mxu3 }
 0x232   :  { %v357_v1 = vmul.f32 %v592_v63, %v341_v56  ;;  %v350_v2 = vsel %vm349_vm4, %v590_v54, %v346_v62  ;;  %vm362_vm6 = vweird.f32 %v592_v63 }
 0x233   :  { %v355_v4 = vsel %vm352_vm5, %v354_v0, %v350_v2  ;;  %vm363_vm8 = vmor %vm361_vm7, %vm362_vm6  ;;  %v413_v17 = vpop.f32.mrf.mxu0 }
 0x234   :  { %v358_v6 = vsub.f32 1.0, %v357_v1  ;;  %v416_v7 = vmul.f32 %v390_v5, %v355_v4  ;;  %v457_v8 = vmul.f32 0.125, %v355_v4 }
 0x236   :  { %v359_v10 = vmul.f32 %v592_v63, %v358_v6  ;;  %v462_v11 = vperm.slane %v457_v8, %v461_v3  ;;  %564 = vmatmul.msk.f32.vlgmr.msrb.gmra.mxu1 %vm161_vm0, %v416_v7 }
 0x238   :  { %v360_v13 = vadd.f32 %v592_v63, %v359_v10  ;;  %566 = vmatmul.msk.f32.vlgmr.msrb.gmra.mxu2 %vm323_vm1, %v462_v11 }
 0x23a   :  { %v364_v15 = vsel %vm363_vm8, %v592_v63, %v360_v13 }
 0x23b   :  { %v369_v16 = vsel %vm366_vm9, %v368_v14, %v364_v15 }
 0x23c   :  { %v417_v18 = vmul.f32 %v413_v17, %v369_v16  ;;  %v458_v19 = vmul.f32 0.125, %v369_v16 }
 0x23e   :  { %v486_v20 = vperm.slane %v458_v19, %v461_v3  ;;  %565 = vmatmul.msk.f32.gmra.mxu1 %vm161_vm0, %v417_v18 }
 0x240   :  { %567 = vmatmul.msk.f32.vlgmr.msrb.gmra.mxu3 %vm323_vm1, %v486_v20 }
 0x2b3   :  { %v449_v22 = vpop.f32.mrf.mxu1 }
 0x2b4   :  { %v450_v23 = vadd.f32 %v584_v21, %v449_v22 }
 0x2b6   :  { %455 = vst.msk [vmem:[#allocation14] sm:$0xff] %vm161_vm0, %v450_v23 }
 0x2bb   :  { %v452_v24 = vpop.f32.mrf.mxu1  ;;  %v482_v25 = vpop.f32.mrf.mxu2 }
 0x2bc   :  { %v453_v26 = vadd.f32 %v584_v21, %v452_v24  ;;  %510 = vst.msk [vmem:[#allocation15] sm:$0x1] %vm509_vm10, %v482_v25 }
 0x2be   :  { %456 = vst.msk [vmem:[#allocation14 + $0x8] sm:$0xff] %vm161_vm0, %v453_v26 }
 0x2bf   :  { %524 = dma.vmem_to_hbm [thread:$0]  %s517_s21, 256, %s519_s23, [#allocation4], %s822_s29, %s822_s29, %s823_s30  }
 0x2c3   :  { %v506_v27 = vpop.f32.mrf.mxu3 }
 0x2c4   :  { %511 = vst.msk [vmem:[#allocation15 + $0x1] sm:$0x1] %vm509_vm10, %v506_v27 }
 0x2c5   :  { %537 = dma.vmem_to_hbm [thread:$0]  %s530_s24, 32, %s532_s26, [#allocation16], %s832_s11, %s832_s11, %s833_s27  }
 0x2c6   :  { %817 = dma.done.wait [#allocation4], 256  }
 0x2c7   :  { %818 = vsyncadd [#allocation4], 4294967040 }
 0x2c8   :  { %819 = dma.done.wait [#allocation16], 32  }
 0x2c9   :  { %820 = vsyncadd [#allocation16], 4294967264 }
 0x2ca   :  { %546 = vsyncpa [#allocation3], 1 }
 0x2cb   :  { %547 = vsyncpa [#allocation6], 1 }
 0x2cc   :  { %548 = vsyncpa [#allocation9], 1 }
 0x2cd   :  { %549 = vsyncpa [#allocation12], 1 }
 0x2ce   :  { %550 = vsyncpa [#allocation4], 1 }
 0x2cf   :  { %551 = vsyncpa [#allocation16], 1 }

</bundles_post_ra>
